<compile_context>
chip_gen: v6e
topology: v6e:2x2x1
jax: 0.10.0
libtpu: 0.0.40
codegen_flags: <defaults>
</compile_context>

<pallas_src>
import math

import jax
import jax.numpy as jnp
from jax.experimental import pallas as pl
from jax.experimental.pallas import tpu as pltpu


# ----------------------------------------------------------------------------
# Pallas kernel
# ----------------------------------------------------------------------------
def _downsample_conv_kernel(x_ref, w_ref, b_ref, o_ref):
    # x_ref: (4, Hh, Wh, Cin)   bf16  phase-split padded input (full planes for
    #                                 this batch element; phase = 2*row_par + col_par)
    # w_ref: (9, Cin, Cout)     bf16  taps flattened as ky*3 + kx
    # b_ref: (1, Cout)          f32
    # o_ref: (1, th, Wo, Cout)  f32   one output-row tile
    th, wo, cout = o_ref.shape[1], o_ref.shape[2], o_ref.shape[3]
    cin = x_ref.shape[-1]

    r0 = pl.multiple_of(pl.program_id(1) * th, th)   # first output row of this tile

    acc = jnp.zeros((th * wo, cout), jnp.float32)
    # Static 9-tap loop == in-kernel im2col / K-reduction loop (fully unrolled).
    for ky in range(3):
        dy, p = ky // 2, ky % 2
        for kx in range(3):
            dx, q = kx // 2, kx % 2
            # Contiguous tap slice — no strided loads thanks to the phase split.
            tap = x_ref[2 * p + q, pl.ds(r0 + dy, th), pl.ds(dx, wo), :]
            acc = acc + jnp.dot(tap.reshape(th * wo, cin), w_ref[ky * 3 + kx],
                                preferred_element_type=jnp.float32)
    acc = acc + b_ref[...]
    o_ref[0] = acc.reshape(th, wo, cout).astype(o_ref.dtype)


# ----------------------------------------------------------------------------
# Parameters (Conv2d(C, C, 3, stride=2, padding=0), HWIO weight layout)
# ----------------------------------------------------------------------------
def init_downsample_params(key, in_channels):
    fan_in = 9 * in_channels
    bound = 1.0 / math.sqrt(fan_in)
    kw, kb = jax.random.split(key)
    w = jax.random.uniform(kw, (3, 3, in_channels, in_channels),
                           jnp.float32, -bound, bound)
    b = jax.random.uniform(kb, (in_channels,), jnp.float32, -bound, bound)
    return {"w": w, "b": b}


# ----------------------------------------------------------------------------
# Forward wrapper: F.pad(x, (0,1,0,1)) + conv3x3 stride 2.  NCHW -> NCHW.
# ----------------------------------------------------------------------------
def downsample_forward(params, x_nchw, *, row_tile_elems=512):
    B, C, H, W = x_nchw.shape
    Ho = (H - 2) // 2 + 1
    Wo = (W - 2) // 2 + 1
    ph = 2 if H % 2 == 0 else 1    # >= the torch (0,1,0,1) pad; extra row/col never read
    pw = 2 if W % 2 == 0 else 1
    Hh, Wh = (H + ph) // 2, (W + pw) // 2            # == Ho + 1, Wo + 1

    # Layout plumbing (one fused XLA pass, zero data expansion):
    # NCHW -> NHWC, bf16 cast, right/bottom zero pad, stride-2 phase split.
    x = jnp.transpose(x_nchw.astype(jnp.bfloat16), (0, 2, 3, 1))
    xp = jnp.pad(x, ((0, 0), (0, ph), (0, pw), (0, 0)))
    xs = xp.reshape(B, Hh, 2, Wh, 2, C)
    xs = jnp.transpose(xs, (0, 2, 4, 1, 3, 5)).reshape(B * 4, Hh, Wh, C)

    w9 = params["w"].reshape(9, C, C).astype(jnp.bfloat16)
    b = params["b"].reshape(1, C).astype(jnp.float32)

    # Output-row tiling: largest divisor of Ho keeping the per-step implicit-GEMM
    # M (= th * Wo) bounded (~512).  Replaces the old `tm = M` fallback: bounded
    # VMEM, double-buffered pipeline, and a >=2 "parallel" axis at real sizes.
    th = 1
    for d in range(1, Ho + 1):
        if Ho % d == 0 and d * Wo <= row_tile_elems:
            th = d
    n_rt = Ho // th

    out = pl.pallas_call(
        _downsample_conv_kernel,
        out_shape=jax.ShapeDtypeStruct((B, Ho, Wo, C), jnp.float32),
        grid=(B, n_rt),
        in_specs=[
            # Full phase planes of batch b; the block index is constant across
            # the row-tile axis so Pallas skips the re-DMA between row tiles.
            pl.BlockSpec((4, Hh, Wh, C), lambda bb, rt: (bb, 0, 0, 0)),
            pl.BlockSpec((9, C, C), lambda bb, rt: (0, 0, 0)),
            pl.BlockSpec((1, C), lambda bb, rt: (0, 0)),
        ],
        out_specs=pl.BlockSpec((1, th, Wo, C), lambda bb, rt: (bb, rt, 0, 0)),
        compiler_params=pltpu.CompilerParams(
            dimension_semantics=("parallel", "parallel")),
    )(xs, w9, b)

    return jnp.transpose(out, (0, 3, 1, 2)).astype(x_nchw.dtype)


# ----------------------------------------------------------------------------
if __name__ == "__main__":
    key = jax.random.PRNGKey(0)
    kp, kx = jax.random.split(key)

    B, C, H, W = 2, 4, 16, 16
    params = init_downsample_params(kp, C)
    x = jax.random.normal(kx, (B, C, H, W), jnp.float32)

    out = jax.jit(downsample_forward)(params, x)
    out = jax.block_until_ready(out)

    assert out.shape == (B, C, H // 2, W // 2), out.shape
    assert bool(jnp.all(jnp.isfinite(out)))

    # Reference: identical math via lax.conv (bf16 operands, f32 accumulation).
    x_nhwc = jnp.transpose(x, (0, 2, 3, 1))
    xp_ref = jnp.pad(x_nhwc, ((0, 0), (0, 1), (0, 1), (0, 0))).astype(jnp.bfloat16)
    ref = jax.lax.conv_general_dilated(
        xp_ref, params["w"].astype(jnp.bfloat16), window_strides=(2, 2),
        padding="VALID", dimension_numbers=("NHWC", "HWIO", "NHWC"),
        preferred_element_type=jnp.float32) + params["b"]
    ref = jnp.transpose(ref, (0, 3, 1, 2))
    max_err = float(jnp.max(jnp.abs(out - ref)))
    assert bool(jnp.allclose(out, ref, atol=5e-3, rtol=5e-3)), max_err

    print("KERNEL_OK")
</pallas_src>

<mosaic_0001>
module attributes {stable_mosaic.version = 11 : i64} {
  func.func @_downsample_conv_kernel(%arg0: i32, %arg1: i32, %arg2: memref<4x9x9x4xbf16, #tpu.memory_space<vmem>>, %arg3: memref<9x4x4xbf16, #tpu.memory_space<vmem>>, %arg4: memref<1x4xf32, #tpu.memory_space<vmem>>, %arg5: memref<1x8x8x4xf32, #tpu.memory_space<vmem>>) attributes {dimension_semantics = [#tpu.dimension_semantics<parallel>, #tpu.dimension_semantics<parallel>], iteration_bounds = array<i64: 2, 1>, scalar_prefetch = 0 : i64, scratch_operands = 0 : i64, tpu.core_type = #tpu.core_type<tc>, window_params = [{transform_indices = @transform_0, window_bounds = array<i64: 4, 9, 9, 4>}, {pipeline_mode = #tpu.pipeline_mode<synchronous>, transform_indices = @transform_1, window_bounds = array<i64: 9, 4, 4>}, {pipeline_mode = #tpu.pipeline_mode<synchronous>, transform_indices = @transform_2, window_bounds = array<i64: 1, 4>}, {transform_indices = @transform_3, window_bounds = array<i64: 1, 8, 8, 4>}]} {
    %c8_i32 = arith.constant 8 : i32
    %0 = arith.muli %arg1, %c8_i32 : i32
    %1 = tpu.assume_multiple %0, 8 : i32
    %cst = arith.constant 0.000000e+00 : f32
    %2 = vector.broadcast %cst : f32 to vector<64x4xf32>
    %c0_i32 = arith.constant 0 : i32
    %3 = arith.addi %1, %c0_i32 : i32
    %c0 = arith.constant 0 : index
    %4 = arith.index_cast %3 : i32 to index
    %c0_0 = arith.constant 0 : index
    %c0_1 = arith.constant 0 : index
    %5 = vector.load %arg2[%c0, %4, %c0_0, %c0_1] : memref<4x9x9x4xbf16, #tpu.memory_space<vmem>>, vector<1x8x8x4xbf16>
    %6 = vector.shape_cast %5 : vector<1x8x8x4xbf16> to vector<8x8x4xbf16>
    %7 = vector.shape_cast %6 : vector<8x8x4xbf16> to vector<64x4xbf16>
    %c0_2 = arith.constant 0 : index
    %c0_3 = arith.constant 0 : index
    %c0_4 = arith.constant 0 : index
    %8 = vector.load %arg3[%c0_2, %c0_3, %c0_4] : memref<9x4x4xbf16, #tpu.memory_space<vmem>>, vector<1x4x4xbf16>
    %9 = vector.shape_cast %8 : vector<1x4x4xbf16> to vector<4x4xbf16>
    %cst_5 = arith.constant dense<0.000000e+00> : vector<64x4xf32>
    %10 = tpu.matmul %7, %9, %cst_5 {dimension_numbers = #tpu.dot_dimension_numbers<[1], [0], [0], [1], [0, 0, 1, 1], [], []>} : vector<64x4xbf16>, vector<4x4xbf16>, vector<64x4xf32> -> vector<64x4xf32>
    %11 = arith.addf %2, %10 : vector<64x4xf32>
    %c0_i32_6 = arith.constant 0 : i32
    %12 = arith.addi %1, %c0_i32_6 : i32
    %c1 = arith.constant 1 : index
    %13 = arith.index_cast %12 : i32 to index
    %c0_7 = arith.constant 0 : index
    %c0_8 = arith.constant 0 : index
    %14 = vector.load %arg2[%c1, %13, %c0_7, %c0_8] : memref<4x9x9x4xbf16, #tpu.memory_space<vmem>>, vector<1x8x8x4xbf16>
    %15 = vector.shape_cast %14 : vector<1x8x8x4xbf16> to vector<8x8x4xbf16>
    %16 = vector.shape_cast %15 : vector<8x8x4xbf16> to vector<64x4xbf16>
    %c1_9 = arith.constant 1 : index
    %c0_10 = arith.constant 0 : index
    %c0_11 = arith.constant 0 : index
    %17 = vector.load %arg3[%c1_9, %c0_10, %c0_11] : memref<9x4x4xbf16, #tpu.memory_space<vmem>>, vector<1x4x4xbf16>
    %18 = vector.shape_cast %17 : vector<1x4x4xbf16> to vector<4x4xbf16>
    %cst_12 = arith.constant dense<0.000000e+00> : vector<64x4xf32>
    %19 = tpu.matmul %16, %18, %cst_12 {dimension_numbers = #tpu.dot_dimension_numbers<[1], [0], [0], [1], [0, 0, 1, 1], [], []>} : vector<64x4xbf16>, vector<4x4xbf16>, vector<64x4xf32> -> vector<64x4xf32>
    %20 = arith.addf %11, %19 : vector<64x4xf32>
    %c0_i32_13 = arith.constant 0 : i32
    %21 = arith.addi %1, %c0_i32_13 : i32
    %c0_14 = arith.constant 0 : index
    %22 = arith.index_cast %21 : i32 to index
    %c1_15 = arith.constant 1 : index
    %c0_16 = arith.constant 0 : index
    %23 = vector.load %arg2[%c0_14, %22, %c1_15, %c0_16] : memref<4x9x9x4xbf16, #tpu.memory_space<vmem>>, vector<1x8x8x4xbf16>
    %24 = vector.shape_cast %23 : vector<1x8x8x4xbf16> to vector<8x8x4xbf16>
    %25 = vector.shape_cast %24 : vector<8x8x4xbf16> to vector<64x4xbf16>
    %c2 = arith.constant 2 : index
    %c0_17 = arith.constant 0 : index
    %c0_18 = arith.constant 0 : index
    %26 = vector.load %arg3[%c2, %c0_17, %c0_18] : memref<9x4x4xbf16, #tpu.memory_space<vmem>>, vector<1x4x4xbf16>
    %27 = vector.shape_cast %26 : vector<1x4x4xbf16> to vector<4x4xbf16>
    %cst_19 = arith.constant dense<0.000000e+00> : vector<64x4xf32>
    %28 = tpu.matmul %25, %27, %cst_19 {dimension_numbers = #tpu.dot_dimension_numbers<[1], [0], [0], [1], [0, 0, 1, 1], [], []>} : vector<64x4xbf16>, vector<4x4xbf16>, vector<64x4xf32> -> vector<64x4xf32>
    %29 = arith.addf %20, %28 : vector<64x4xf32>
    %c0_i32_20 = arith.constant 0 : i32
    %30 = arith.addi %1, %c0_i32_20 : i32
    %c2_21 = arith.constant 2 : index
    %31 = arith.index_cast %30 : i32 to index
    %c0_22 = arith.constant 0 : index
    %c0_23 = arith.constant 0 : index
    %32 = vector.load %arg2[%c2_21, %31, %c0_22, %c0_23] : memref<4x9x9x4xbf16, #tpu.memory_space<vmem>>, vector<1x8x8x4xbf16>
    %33 = vector.shape_cast %32 : vector<1x8x8x4xbf16> to vector<8x8x4xbf16>
    %34 = vector.shape_cast %33 : vector<8x8x4xbf16> to vector<64x4xbf16>
    %c3 = arith.constant 3 : index
    %c0_24 = arith.constant 0 : index
    %c0_25 = arith.constant 0 : index
    %35 = vector.load %arg3[%c3, %c0_24, %c0_25] : memref<9x4x4xbf16, #tpu.memory_space<vmem>>, vector<1x4x4xbf16>
    %36 = vector.shape_cast %35 : vector<1x4x4xbf16> to vector<4x4xbf16>
    %cst_26 = arith.constant dense<0.000000e+00> : vector<64x4xf32>
    %37 = tpu.matmul %34, %36, %cst_26 {dimension_numbers = #tpu.dot_dimension_numbers<[1], [0], [0], [1], [0, 0, 1, 1], [], []>} : vector<64x4xbf16>, vector<4x4xbf16>, vector<64x4xf32> -> vector<64x4xf32>
    %38 = arith.addf %29, %37 : vector<64x4xf32>
    %c0_i32_27 = arith.constant 0 : i32
    %39 = arith.addi %1, %c0_i32_27 : i32
    %c3_28 = arith.constant 3 : index
    %40 = arith.index_cast %39 : i32 to index
    %c0_29 = arith.constant 0 : index
    %c0_30 = arith.constant 0 : index
    %41 = vector.load %arg2[%c3_28, %40, %c0_29, %c0_30] : memref<4x9x9x4xbf16, #tpu.memory_space<vmem>>, vector<1x8x8x4xbf16>
    %42 = vector.shape_cast %41 : vector<1x8x8x4xbf16> to vector<8x8x4xbf16>
    %43 = vector.shape_cast %42 : vector<8x8x4xbf16> to vector<64x4xbf16>
    %c4 = arith.constant 4 : index
    %c0_31 = arith.constant 0 : index
    %c0_32 = arith.constant 0 : index
    %44 = vector.load %arg3[%c4, %c0_31, %c0_32] : memref<9x4x4xbf16, #tpu.memory_space<vmem>>, vector<1x4x4xbf16>
    %45 = vector.shape_cast %44 : vector<1x4x4xbf16> to vector<4x4xbf16>
    %cst_33 = arith.constant dense<0.000000e+00> : vector<64x4xf32>
    %46 = tpu.matmul %43, %45, %cst_33 {dimension_numbers = #tpu.dot_dimension_numbers<[1], [0], [0], [1], [0, 0, 1, 1], [], []>} : vector<64x4xbf16>, vector<4x4xbf16>, vector<64x4xf32> -> vector<64x4xf32>
    %47 = arith.addf %38, %46 : vector<64x4xf32>
    %c0_i32_34 = arith.constant 0 : i32
    %48 = arith.addi %1, %c0_i32_34 : i32
    %c2_35 = arith.constant 2 : index
    %49 = arith.index_cast %48 : i32 to index
    %c1_36 = arith.constant 1 : index
    %c0_37 = arith.constant 0 : index
    %50 = vector.load %arg2[%c2_35, %49, %c1_36, %c0_37] : memref<4x9x9x4xbf16, #tpu.memory_space<vmem>>, vector<1x8x8x4xbf16>
    %51 = vector.shape_cast %50 : vector<1x8x8x4xbf16> to vector<8x8x4xbf16>
    %52 = vector.shape_cast %51 : vector<8x8x4xbf16> to vector<64x4xbf16>
    %c5 = arith.constant 5 : index
    %c0_38 = arith.constant 0 : index
    %c0_39 = arith.constant 0 : index
    %53 = vector.load %arg3[%c5, %c0_38, %c0_39] : memref<9x4x4xbf16, #tpu.memory_space<vmem>>, vector<1x4x4xbf16>
    %54 = vector.shape_cast %53 : vector<1x4x4xbf16> to vector<4x4xbf16>
    %cst_40 = arith.constant dense<0.000000e+00> : vector<64x4xf32>
    %55 = tpu.matmul %52, %54, %cst_40 {dimension_numbers = #tpu.dot_dimension_numbers<[1], [0], [0], [1], [0, 0, 1, 1], [], []>} : vector<64x4xbf16>, vector<4x4xbf16>, vector<64x4xf32> -> vector<64x4xf32>
    %56 = arith.addf %47, %55 : vector<64x4xf32>
    %c1_i32 = arith.constant 1 : i32
    %57 = arith.addi %1, %c1_i32 : i32
    %c0_41 = arith.constant 0 : index
    %58 = arith.index_cast %57 : i32 to index
    %c0_42 = arith.constant 0 : index
    %c0_43 = arith.constant 0 : index
    %59 = vector.load %arg2[%c0_41, %58, %c0_42, %c0_43] : memref<4x9x9x4xbf16, #tpu.memory_space<vmem>>, vector<1x8x8x4xbf16>
    %60 = vector.shape_cast %59 : vector<1x8x8x4xbf16> to vector<8x8x4xbf16>
    %61 = vector.shape_cast %60 : vector<8x8x4xbf16> to vector<64x4xbf16>
    %c6 = arith.constant 6 : index
    %c0_44 = arith.constant 0 : index
    %c0_45 = arith.constant 0 : index
    %62 = vector.load %arg3[%c6, %c0_44, %c0_45] : memref<9x4x4xbf16, #tpu.memory_space<vmem>>, vector<1x4x4xbf16>
    %63 = vector.shape_cast %62 : vector<1x4x4xbf16> to vector<4x4xbf16>
    %cst_46 = arith.constant dense<0.000000e+00> : vector<64x4xf32>
    %64 = tpu.matmul %61, %63, %cst_46 {dimension_numbers = #tpu.dot_dimension_numbers<[1], [0], [0], [1], [0, 0, 1, 1], [], []>} : vector<64x4xbf16>, vector<4x4xbf16>, vector<64x4xf32> -> vector<64x4xf32>
    %65 = arith.addf %56, %64 : vector<64x4xf32>
    %c1_i32_47 = arith.constant 1 : i32
    %66 = arith.addi %1, %c1_i32_47 : i32
    %c1_48 = arith.constant 1 : index
    %67 = arith.index_cast %66 : i32 to index
    %c0_49 = arith.constant 0 : index
    %c0_50 = arith.constant 0 : index
    %68 = vector.load %arg2[%c1_48, %67, %c0_49, %c0_50] : memref<4x9x9x4xbf16, #tpu.memory_space<vmem>>, vector<1x8x8x4xbf16>
    %69 = vector.shape_cast %68 : vector<1x8x8x4xbf16> to vector<8x8x4xbf16>
    %70 = vector.shape_cast %69 : vector<8x8x4xbf16> to vector<64x4xbf16>
    %c7 = arith.constant 7 : index
    %c0_51 = arith.constant 0 : index
    %c0_52 = arith.constant 0 : index
    %71 = vector.load %arg3[%c7, %c0_51, %c0_52] : memref<9x4x4xbf16, #tpu.memory_space<vmem>>, vector<1x4x4xbf16>
    %72 = vector.shape_cast %71 : vector<1x4x4xbf16> to vector<4x4xbf16>
    %cst_53 = arith.constant dense<0.000000e+00> : vector<64x4xf32>
    %73 = tpu.matmul %70, %72, %cst_53 {dimension_numbers = #tpu.dot_dimension_numbers<[1], [0], [0], [1], [0, 0, 1, 1], [], []>} : vector<64x4xbf16>, vector<4x4xbf16>, vector<64x4xf32> -> vector<64x4xf32>
    %74 = arith.addf %65, %73 : vector<64x4xf32>
    %c1_i32_54 = arith.constant 1 : i32
    %75 = arith.addi %1, %c1_i32_54 : i32
    %c0_55 = arith.constant 0 : index
    %76 = arith.index_cast %75 : i32 to index
    %c1_56 = arith.constant 1 : index
    %c0_57 = arith.constant 0 : index
    %77 = vector.load %arg2[%c0_55, %76, %c1_56, %c0_57] : memref<4x9x9x4xbf16, #tpu.memory_space<vmem>>, vector<1x8x8x4xbf16>
    %78 = vector.shape_cast %77 : vector<1x8x8x4xbf16> to vector<8x8x4xbf16>
    %79 = vector.shape_cast %78 : vector<8x8x4xbf16> to vector<64x4xbf16>
    %c8 = arith.constant 8 : index
    %c0_58 = arith.constant 0 : index
    %c0_59 = arith.constant 0 : index
    %80 = vector.load %arg3[%c8, %c0_58, %c0_59] : memref<9x4x4xbf16, #tpu.memory_space<vmem>>, vector<1x4x4xbf16>
    %81 = vector.shape_cast %80 : vector<1x4x4xbf16> to vector<4x4xbf16>
    %cst_60 = arith.constant dense<0.000000e+00> : vector<64x4xf32>
    %82 = tpu.matmul %79, %81, %cst_60 {dimension_numbers = #tpu.dot_dimension_numbers<[1], [0], [0], [1], [0, 0, 1, 1], [], []>} : vector<64x4xbf16>, vector<4x4xbf16>, vector<64x4xf32> -> vector<64x4xf32>
    %83 = arith.addf %74, %82 : vector<64x4xf32>
    %c0_61 = arith.constant 0 : index
    %c0_62 = arith.constant 0 : index
    %84 = vector.load %arg4[%c0_61, %c0_62] : memref<1x4xf32, #tpu.memory_space<vmem>>, vector<1x4xf32>
    %85 = vector.broadcast %84 : vector<1x4xf32> to vector<64x4xf32>
    %86 = arith.addf %83, %85 : vector<64x4xf32>
    %87 = vector.shape_cast %86 : vector<64x4xf32> to vector<8x8x4xf32>
    %c0_63 = arith.constant 0 : index
    %c0_64 = arith.constant 0 : index
    %c0_65 = arith.constant 0 : index
    %c0_66 = arith.constant 0 : index
    %88 = vector.load %arg5[%c0_63, %c0_64, %c0_65, %c0_66] : memref<1x8x8x4xf32, #tpu.memory_space<vmem>>, vector<1x8x8x4xf32>
    %89 = vector.shape_cast %88 : vector<1x8x8x4xf32> to vector<8x8x4xf32>
    %90 = vector.shape_cast %87 : vector<8x8x4xf32> to vector<1x8x8x4xf32>
    tpu.vector_store %arg5[%c0_63, %c0_64, %c0_65, %c0_66], %90 {strides = array<i32>} : memref<1x8x8x4xf32, #tpu.memory_space<vmem>>, vector<1x8x8x4xf32>,
    return
  }
  func.func @transform_0(%arg0: i32, %arg1: i32) -> (i32, i32, i32, i32) {
    %c0_i32 = arith.constant 0 : i32
    %c0_i32_0 = arith.constant 0 : i32
    %c0_i32_1 = arith.constant 0 : i32
    %c0_i32_2 = arith.constant 0 : i32
    return %arg0, %c0_i32, %c0_i32_0, %c0_i32_1 : i32, i32, i32, i32
  }
  func.func @transform_1(%arg0: i32, %arg1: i32) -> (i32, i32, i32) {
    %c0_i32 = arith.constant 0 : i32
    %c0_i32_0 = arith.constant 0 : i32
    %c0_i32_1 = arith.constant 0 : i32
    %c0_i32_2 = arith.constant 0 : i32
    return %c0_i32, %c0_i32_0, %c0_i32_1 : i32, i32, i32
  }
  func.func @transform_2(%arg0: i32, %arg1: i32) -> (i32, i32) {
    %c0_i32 = arith.constant 0 : i32
    %c0_i32_0 = arith.constant 0 : i32
    %c0_i32_1 = arith.constant 0 : i32
    return %c0_i32, %c0_i32_0 : i32, i32
  }
  func.func @transform_3(%arg0: i32, %arg1: i32) -> (i32, i32, i32, i32) {
    %c0_i32 = arith.constant 0 : i32
    %c0_i32_0 = arith.constant 0 : i32
    %c0_i32_1 = arith.constant 0 : i32
    return %arg0, %arg1, %c0_i32, %c0_i32_0 : i32, i32, i32, i32
  }
}

</mosaic_0001>

<bundles_post_ra>
// kernel: downsample_forward.1
= control target key start
LH: loop header
LB: loop body
LE: loop exit
PB: predicated region body
PF: predicated region fallthrough
CT: control target
= control target key end

     0   :  { %s2138_s12 = smov 0   ;;  %s2140_s13 = smov 0   ;;  %s2438_s0 = inlined_call_operand.vmem [shape: bf16[8,9,9,4], index: 0, kind: input, shape index: {}]   ;;  %s2439_s1 = inlined_call_operand.vmem [shape: bf16[9,4,4], index: 1, kind: input, shape index: {}]   ;;  %s2440_s2 = inlined_call_operand.vmem [shape: f32[1,4], index: 2, kind: input, shape index: {}]   ;;  %s2441_s3 = inlined_call_operand.vmem [shape: f32[2,8,8,4], index: 3, kind: output, shape index: {}]  }
   0x1   :  { %s2142_s14 = smov 0  }
   0x2 LB: > { %s25_s15 = sadd.s32 1, %s2112_s13  ;;  %p1737_p0 = scmp.ge.s32.totalorder %s2116_s14, 1  ;;  %s2116_s14 = sphi %s2142_s14, %s13_s14   ;;  %s2112_s13 = sphi %s2140_s13, %s2445_s13   ;;  %s2108_s12 = sphi %s2138_s12, %s2444_s12  }
   0x3   : > { %p27_p1 = scmp.ge.s32.totalorder %s25_s15, 2  ;;  %p153_p2 = scmp.lt.s32.totalorder %s2116_s14, 3 }
   0x5   : > { %s2447_s15 = smov (%p27_p1, %s25_s15), 0  ;;  %p154_p3 = pnand %p1737_p0, %p153_p2 }
   0x6   : > { %s1738_s18 = sshll.u32 (!%p154_p3), %s2108_s12, 2  ;;  %p190_p5 = scmp.lt.s32.totalorder (!%p154_p3), %s2108_s12, 1 }
   0x7   : > { %157 = sbr.rel (%p154_p3) target bundleno = 297 (0x129), region = 32  ;;  %p183_p4 = scmp.lt.s32.totalorder (!%p154_p3), %s1738_s18, 7 }
   0xc   : > { %v1750_v0 = vld [vmem:[%s2439_s1 + $0x2] sm:$0x3]  ;;  %vm259_vm0 = vcmask 1041408   ;;  %v212_v2 = vld [vmem:[%s2439_s1] sm:$0x3]  ;;  %s2449_s18 = smov (!%p183_p4, %s1738_s18), 7 }
   0xd   : > { %2036 = vmatprep.subr.msk.bf16.mxu1 %vm259_vm0, %v1750_v0  ;;  %2035 = vmatprep.subr.msk.bf16.mxu0 %vm259_vm0, %v1750_v0  ;;  %v261_v1 = vsel %vm259_vm0, %v1750_v0, 0  ;;  %v1767_v3 = vld [vmem:[%s2439_s1 + $0x4] sm:$0x3]  ;;  %s2045_s23 = smul.u32 72, %s2449_s18  ;;  %vm246_vm1 = vcmask 31744   ;;  %v361_v4 = vsel %vm259_vm0, %v212_v2, 0 }
   0xe   : > { %2034 = vmatpush3.bf16.msra.mxu1 %v261_v1  ;;  %1944 = vmatpush3.bf16.msra.mxu0 %v261_v1  ;;  %v586_v5 = vsel %vm259_vm0, %v1767_v3, 0  ;;  %v1784_v7 = vld [vmem:[%s2439_s1 + $0x6] sm:$0x3]  ;;  %v1801_v8 = vld [vmem:[%s2439_s1 + $0x8] sm:$0x3]  ;;  %s2451_s12 = smov (!%p190_p5, %s2108_s12), 1 }
   0xf   : > { %2037 = vmatprep.subr.msk.bf16.mxu1 %vm259_vm0, %v212_v2  ;;  %2038 = vmatprep.subr.msk.bf16.mxu0 %vm259_vm0, %v1767_v3  ;;  %s2176_s26 = scalar_lea.vmem %s2438_s0, %s2045_s23  ;;  %vm444_vm2 = vsmask.f32 3328  ;;  %vm445_vm3 = vsmask.f32 7440  ;;  %v707_v13 = vsel %vm259_vm0, %v1784_v7, 0  ;;  %v2197_v14 = vsel %vm259_vm0, %v1801_v8, 0 }
  0x10   : > { %v2070_v6 = vld [vmem:[%s2176_s26 + $0x48] ss:$8 sps:$4 sm:$0xff]   ;;  %v2072_v10 = vld [vmem:[%s2176_s26 + $0x58] ss:$8 sps:$4 sm:$0xff]   ;;  %v429_v16 = vld [vmem:[%s2176_s26 + $0x4] sm:$0x1] }
  0x11   : > { %v2071_v9 = vld [vmem:[%s2176_s26 + $0x68] ss:$8 sps:$4 sm:$0xff]   ;;  %1945 = vmatprep.mubr.msk.bf16.mxu0 %vm246_vm1, %v2070_v6  ;;  %v2073_v11 = vld [vmem:[%s2176_s26 + $0x78] ss:$8 sps:$4 sm:$0xff]   ;;  %v431_v19 = vld [vmem:[%s2176_s26 + $0xc] sm:$0x1] }
  0x12   : > { %1949 = vmatprep.mubr.msk.bf16.mxu1 %vm246_vm1, %v2071_v9  ;;  %1946 = vmatmul.mubr.msk.bf16.vlgmr.msra.gmra.mxu0 %vm246_vm1, %v2072_v10  ;;  %v2074_v12 = vld [vmem:[%s2176_s26] ss:$8 sps:$4 sm:$0xff]   ;;  %v2075_v18 = vld [vmem:[%s2176_s26 + $0x10] ss:$8 sps:$4 sm:$0xff]   ;;  %v457_v22 = vshll.u32 %v429_v16, 16  ;;  %v471_v25 = vshll.u32 %v431_v19, 16  ;;  %vm2218_vm4 = vmor %vm444_vm2, %vm445_vm3 }
  0x13   : > { %1950 = vmatmul.mubr.msk.bf16.vlgmr.msra.gmra.mxu1 %vm246_vm1, %v2073_v11  ;;  %1964 = vmatpush3.bf16.msra.mxu0 %v586_v5  ;;  %v428_v15 = vld [vmem:[%s2176_s26] sm:$0xf]  ;;  %v430_v17 = vld [vmem:[%s2176_s26 + $0x8] sm:$0xf]  ;;  %v432_v26 = vld [vmem:[%s2176_s26 + $0x10] sm:$0xf] }
  0x14   : > { %1954 = vmatpush3.bf16.msra.mxu1 %v361_v4  ;;  %1955 = vmatprep.mubr.msk.bf16.mxu1 %vm246_vm1, %v2074_v12  ;;  %v448_v20 = vshrl.u32 %v428_v15, 16  ;;  %v451_v21 = vshll.u32 %v428_v15, 16  ;;  %v462_v23 = vshrl.u32 %v430_v17, 16  ;;  %v465_v24 = vshll.u32 %v430_v17, 16  ;;  %v433_v27 = vld [vmem:[%s2176_s26 + $0x14] sm:$0x1] }
  0x15   : > { %2039 = vmatprep.subr.msk.bf16.mxu1 %vm259_vm0, %v1784_v7  ;;  %2040 = vmatprep.subr.msk.bf16.mxu0 %vm259_vm0, %v1801_v8  ;;  %v459_v30 = vrot.slane %v457_v22, 5  ;;  %v434_v32 = vld [vmem:[%s2176_s26 + $0x18] sm:$0xf]  ;;  %v473_v34 = vrot.slane %v471_v25, 5  ;;  %v435_v35 = vld [vmem:[%s2176_s26 + $0x1c] sm:$0x1] }
  0x16   : > { %v450_v28 = vrot.slane %v448_v20, 4  ;;  %v453_v29 = vrot.slane %v451_v21, 5  ;;  %v464_v31 = vrot.slane %v462_v23, 4  ;;  %v467_v33 = vrot.slane %v465_v24, 5  ;;  %v2214_v38 = vld [vmem:[%s2439_s1 + $0xa] sm:$0x3] }
  0x17   : > { %v476_v36 = vshrl.u32 %v432_v26, 16  ;;  %v479_v37 = vshll.u32 %v432_v26, 16  ;;  %v485_v40 = vshll.u32 %v433_v27, 16  ;;  %v490_v41 = vshrl.u32 %v434_v32, 16  ;;  %v2076_v52 = vld [vmem:[%s2176_s26 + $0x20] ss:$8 sps:$4 sm:$0xff]  }
  0x18   : > { %v454_v39 = vor.u32 %v453_v29, %v450_v28  ;;  %v493_v42 = vshll.u32 %v434_v32, 16  ;;  %v468_v44 = vor.u32 %v467_v33, %v464_v31  ;;  %v499_v47 = vshll.u32 %v435_v35, 16  ;;  %v2077_v58 = vld [vmem:[%s2176_s26 + $0x30] ss:$8 sps:$4 sm:$0xff]   ;;  %v436_v59 = vld [vmem:[%s2176_s26 + $0x20] sm:$0xf] }
  0x19   : > { %v478_v45 = vrot.slane %v476_v36, 4  ;;  %v481_v46 = vrot.slane %v479_v37, 5  ;;  %v487_v49 = vrot.slane %v485_v40, 5  ;;  %v492_v50 = vrot.slane %v490_v41, 4  ;;  %v437_v60 = vld [vmem:[%s2176_s26 + $0x24] sm:$0x1] }
  0x1a   : > { %v455_v48 = vrot.slane %v454_v39, 4  ;;  %v495_v51 = vrot.slane %v493_v42, 5  ;;  %v469_v53 = vrot.slane %v468_v44, 4  ;;  %v501_v55 = vrot.slane %v499_v47, 5  ;;  %v438_v63 = vld [vmem:[%s2176_s26 + $0x28] sm:$0xf] }
  0x1b   : > { %1956 = vmatmul.mubr.msk.bf16.vlgmr.msra.gmra.mxu1 %vm246_vm1, %v2075_v18  ;;  %v482_v54 = vor.u32 %v481_v46, %v478_v45  ;;  %v439_v0 = vld [vmem:[%s2176_s26 + $0x2c] sm:$0x1]  ;;  %v504_v1 = vshrl.u32 %v436_v59, 16  ;;  %v507_v4 = vshll.u32 %v436_v59, 16  ;;  %v513_v5 = vshll.u32 %v437_v60, 16  ;;  %s1897_s16 = sshll.u32 %s2451_s12, 6 }
  0x1c   : > { %1974 = vmatpush3.bf16.msra.mxu1 %v707_v13  ;;  %v460_v56 = vsel %vm2218_vm4, %v455_v48, %v459_v30  ;;  %v496_v57 = vor.u32 %v495_v51, %v492_v50  ;;  %1959 = vmatprep.mubr.msk.bf16.mxu1 %vm246_vm1, %v2076_v52  ;;  %v474_v61 = vsel %vm2218_vm4, %v469_v53, %v473_v34  ;;  %v440_v6 = vld [vmem:[%s2176_s26 + $0x30] sm:$0xf]  ;;  %v518_v9 = vshrl.u32 %v438_v63, 16  ;;  %v441_v11 = vld [vmem:[%s2176_s26 + $0x34] sm:$0x1]  ;;  %s2410_s12 = scalar_lea.vmem %s2441_s3, %s1897_s16 }
  0x1d   : > { %2041 = vmatprep.subr.msk.bf16.mxu1 %vm259_vm0, %v2214_v38  ;;  %v483_v62 = vrot.slane %v482_v54, 4  ;;  %v1768_v2 = vcombine.low %v460_v56, %v474_v61  ;;  %v506_v8 = vrot.slane %v504_v1, 4  ;;  %v521_v10 = vshll.u32 %v438_v63, 16  ;;  %v442_v17 = vld [vmem:[%s2176_s26 + $0x38] sm:$0xf] }
  0x1e   : > { %v497_v3 = vrot.slane %v496_v57, 4  ;;  %v509_v13 = vrot.slane %v507_v4, 5  ;;  %v515_v15 = vrot.slane %v513_v5, 5  ;;  %v527_v16 = vshll.u32 %v439_v0, 16  ;;  %v1843_v18 = vld [vmem:[%s2439_s1 + $0xc] sm:$0x3] }
  0x1f   : > { %v488_v7 = vsel %vm2218_vm4, %v483_v62, %v487_v49  ;;  %1965 = vmatprep.mubr.msk.bf16.mxu0 %vm246_vm1, %v1768_v2  ;;  %v520_v20 = vrot.slane %v518_v9, 4  ;;  %v523_v21 = vrot.slane %v521_v10, 5  ;;  %v443_v22 = vld [vmem:[%s2176_s26 + $0x3c] sm:$0x1]  ;;  %v532_v23 = vshrl.u32 %v440_v6, 16 }
  0x20   : > { %v502_v12 = vsel %vm2218_vm4, %v497_v3, %v501_v55  ;;  %v510_v24 = vor.u32 %v509_v13, %v506_v8  ;;  %v529_v25 = vrot.slane %v527_v16, 5  ;;  %v535_v26 = vshll.u32 %v440_v6, 16  ;;  %v2078_v35 = vld [vmem:[%s2176_s26 + $0x90] ss:$8 sps:$4 sm:$0xff]   ;;  %v2079_v44 = vld [vmem:[%s2176_s26 + $0xa0] ss:$8 sps:$4 sm:$0xff]  }
  0x21   : > { %v1769_v19 = vcombine.low %v488_v7, %v502_v12  ;;  %v541_v27 = vshll.u32 %v441_v11, 16  ;;  %v524_v28 = vor.u32 %v523_v21, %v520_v20  ;;  %v534_v29 = vrot.slane %v532_v23, 4  ;;  %v1860_v51 = vld [vmem:[%s2439_s1 + $0xe] sm:$0x3]  ;;  %v2082_v53 = vld [vmem:[%s2176_s26 + $0xb0] ss:$8 sps:$4 sm:$0xff]  }
  0x22   : > { %v546_v30 = vshrl.u32 %v442_v17, 16  ;;  %v549_v31 = vshll.u32 %v442_v17, 16  ;;  %v511_v32 = vrot.slane %v510_v24, 4  ;;  %v537_v33 = vrot.slane %v535_v26, 5  ;;  %v2083_v57 = vld [vmem:[%s2176_s26 + $0xc0] ss:$8 sps:$4 sm:$0xff]  }
  0x23   : > { %1960 = vmatmul.mubr.msk.bf16.gmra.mxu1 %vm246_vm1, %v2077_v58  ;;  %1966 = vmatmul.mubr.msk.bf16.vlgmr.msra.gmra.mxu0 %vm246_vm1, %v1769_v19  ;;  %v555_v34 = vshll.u32 %v443_v22, 16  ;;  %v525_v36 = vrot.slane %v524_v28, 4  ;;  %v543_v42 = vrot.slane %v541_v27, 5  ;;  %v1058_v49 = vsel %vm259_vm0, %v2214_v38, 0  ;;  %v2080_v38 = vld [vmem:[%s2176_s26 + $0xd8] ss:$8 sps:$4 sm:$0xff]  }
  0x24   : > { %1984 = vmatpush3.bf16.msra.mxu0 %v2197_v14  ;;  %v548_v37 = vrot.slane %v546_v30, 4  ;;  %v551_v39 = vrot.slane %v549_v31, 5  ;;  %v516_v40 = vsel %vm2218_vm4, %v511_v32, %v515_v15  ;;  %v538_v41 = vor.u32 %v537_v33, %v534_v29  ;;  %1975 = vmatprep.mubr.msk.bf16.mxu1 %vm246_vm1, %v2078_v35  ;;  %v1810_v58 = vld [vmem:[%s2176_s26 + $0x90] sm:$0xf]  ;;  %v1811_v59 = vld [vmem:[%s2176_s26 + $0x94] sm:$0x1] }
  0x25   : > { %2042 = vmatprep.subr.msk.bf16.mxu0 %vm259_vm0, %v1843_v18  ;;  %v530_v14 = vsel %vm2218_vm4, %v525_v36, %v529_v25  ;;  %v557_v46 = vrot.slane %v555_v34, 5  ;;  %v1180_v56 = vsel %vm259_vm0, %v1843_v18, 0  ;;  %v1812_v60 = vld [vmem:[%s2176_s26 + $0x98] sm:$0xf]  ;;  %v1813_v61 = vld [vmem:[%s2176_s26 + $0x9c] sm:$0x1] }
  0x26   : > { %v552_v45 = vor.u32 %v551_v39, %v548_v37  ;;  %v1770_v47 = vcombine.low %v516_v40, %v530_v14  ;;  %v539_v48 = vrot.slane %v538_v41, 4  ;;  %v920_v62 = vshrl.u32 %v1810_v58, 16  ;;  %v1814_v2 = vld [vmem:[%s2176_s26 + $0xa0] sm:$0xf]  ;;  %v2081_v3 = vld [vmem:[%s2176_s26 + $0xe8] ss:$8 sps:$4 sm:$0xff]  }
  0x27   : > { %v923_v63 = vshll.u32 %v1810_v58, 16  ;;  %v929_v0 = vshll.u32 %v1811_v59, 16  ;;  %v934_v1 = vshrl.u32 %v1812_v60, 16  ;;  %v937_v4 = vshll.u32 %v1812_v60, 16  ;;  %v1815_v6 = vld [vmem:[%s2176_s26 + $0xa4] sm:$0x1] }
  0x28   : > { %v553_v50 = vrot.slane %v552_v45, 4  ;;  %1969 = vmatprep.mubr.msk.bf16.mxu0 %vm246_vm1, %v1770_v47  ;;  %v544_v52 = vsel %vm2218_vm4, %v539_v48, %v543_v42  ;;  %v943_v5 = vshll.u32 %v1813_v61, 16  ;;  %v1816_v7 = vld [vmem:[%s2176_s26 + $0xa8] sm:$0xf]  ;;  %v2084_v8 = vld [vmem:[%s2176_s26 + $0xf8] ss:$8 sps:$4 sm:$0xff]  }
  0x29   : > { %v922_v9 = vrot.slane %v920_v62, 4  ;;  %v925_v10 = vrot.slane %v923_v63, 5  ;;  %v931_v11 = vrot.slane %v929_v0, 5  ;;  %v936_v12 = vrot.slane %v934_v1, 4  ;;  %v1817_v13 = vld [vmem:[%s2176_s26 + $0xac] sm:$0x1] }
  0x2a   : > { %v558_v54 = vsel %vm2218_vm4, %v553_v50, %v557_v46  ;;  %v939_v15 = vrot.slane %v937_v4, 5  ;;  %v945_v16 = vrot.slane %v943_v5, 5  ;;  %v948_v17 = vshrl.u32 %v1814_v2, 16  ;;  %v2292_v27 = vld [vmem:[%s2439_s1 + $0x10] sm:$0x3] }
  0x2b   : > { %1976 = vmatmul.mubr.msk.bf16.vlgmr.msra.gmra.mxu1 %vm246_vm1, %v2079_v44  ;;  %v1771_v55 = vcombine.low %v544_v52, %v558_v54  ;;  %v951_v18 = vshll.u32 %v1814_v2, 16  ;;  %v926_v19 = vor.u32 %v925_v10, %v922_v9  ;;  %v957_v20 = vshll.u32 %v1815_v6, 16  ;;  %v1818_v39 = vld [vmem:[%s2176_s26 + $0xb0] sm:$0xf]  ;;  %v1819_v40 = vld [vmem:[%s2176_s26 + $0xb4] sm:$0x1] }
  0x2c   : > { %1994 = vmatpush3.bf16.msra.mxu1 %v1058_v49  ;;  %1979 = vmatprep.mubr.msk.bf16.mxu1 %vm246_vm1, %v2082_v53  ;;  %v962_v21 = vshrl.u32 %v1816_v7, 16  ;;  %v965_v22 = vshll.u32 %v1816_v7, 16  ;;  %v940_v23 = vor.u32 %v939_v15, %v936_v12  ;;  %v950_v24 = vrot.slane %v948_v17, 4  ;;  %v1820_v41 = vld [vmem:[%s2176_s26 + $0xb8] sm:$0xf] }
  0x2d   : > { %2043 = vmatprep.subr.msk.bf16.mxu1 %vm259_vm0, %v1860_v51  ;;  %1970 = vmatmul.mubr.msk.bf16.gmra.mxu0 %vm246_vm1, %v1771_v55  ;;  %v953_v25 = vrot.slane %v951_v18, 5  ;;  %v971_v26 = vshll.u32 %v1817_v13, 16  ;;  %v927_v28 = vrot.slane %v926_v19, 4  ;;  %v1301_v31 = vsel %vm259_vm0, %v1860_v51, 0  ;;  %v2085_v42 = vld [vmem:[%s2176_s26 + $0x108] ss:$8 sps:$4 sm:$0xff]  }
  0x2e   : > { %1985 = vmatprep.mubr.msk.bf16.mxu0 %vm246_vm1, %v2080_v38  ;;  %v964_v29 = vrot.slane %v962_v21, 4  ;;  %v967_v30 = vrot.slane %v965_v22, 5  ;;  %v941_v32 = vrot.slane %v940_v23, 4  ;;  %v959_v34 = vrot.slane %v957_v20, 5  ;;  %v1821_v45 = vld [vmem:[%s2176_s26 + $0xbc] sm:$0x1] }
  0x2f   : > { %v954_v33 = vor.u32 %v953_v25, %v950_v24  ;;  %v973_v35 = vrot.slane %v971_v26, 5  ;;  %v932_v36 = vsel %vm2218_vm4, %v927_v28, %v931_v11  ;;  %v976_v46 = vshrl.u32 %v1818_v39, 16  ;;  %v2086_v50 = vld [vmem:[%s2176_s26 + $0x8] ss:$8 sps:$4 sm:$0xff]   ;;  %v1822_v53 = vld [vmem:[%s2176_s26 + $0xc0] sm:$0xf] }
  0x30   : > { %v968_v37 = vor.u32 %v967_v30, %v964_v29  ;;  %v946_v44 = vsel %vm2218_vm4, %v941_v32, %v945_v16  ;;  %v979_v47 = vshll.u32 %v1818_v39, 16  ;;  %v985_v51 = vshll.u32 %v1819_v40, 16  ;;  %v1824_v62 = vld [vmem:[%s2176_s26 + $0xc8] sm:$0xf]  ;;  %v1825_v2 = vld [vmem:[%s2176_s26 + $0xcc] sm:$0x1] }
  0x31   : > { %v955_v14 = vrot.slane %v954_v33, 4  ;;  %v1827_v48 = vcombine.low %v932_v36, %v946_v44  ;;  %v990_v52 = vshrl.u32 %v1820_v41, 16  ;;  %v978_v38 = vrot.slane %v976_v46, 4  ;;  %v2087_v16 = vld [vmem:[%s2176_s26 + $0x18] ss:$8 sps:$4 sm:$0xff]  }
  0x32   : > { %v969_v49 = vrot.slane %v968_v37, 4  ;;  %v981_v55 = vrot.slane %v979_v47, 5  ;;  %v987_v59 = vrot.slane %v985_v51, 5  ;;  %v999_v61 = vshll.u32 %v1821_v45, 16  ;;  %v2088_v29 = vld [vmem:[%s2176_s26 + $0x28] ss:$8 sps:$4 sm:$0xff]  }
  0x33   : > { %1980 = vmatmul.mubr.msk.bf16.gmra.mxu1 %vm246_vm1, %v2083_v57  ;;  %v960_v54 = vsel %vm2218_vm4, %v955_v14, %v959_v34  ;;  %v1823_v57 = vld [vmem:[%s2176_s26 + $0xc4] sm:$0x1]  ;;  %v992_v60 = vrot.slane %v990_v52, 4  ;;  %v1007_v5 = vshll.u32 %v1822_v53, 16  ;;  %v1018_v7 = vshrl.u32 %v1824_v62, 16 }
  0x34   : > { %1995 = vmatprep.mubr.msk.bf16.mxu1 %vm246_vm1, %v1827_v48  ;;  %v974_v58 = vsel %vm2218_vm4, %v969_v49, %v973_v35  ;;  %v982_v0 = vor.u32 %v981_v55, %v978_v38  ;;  %v1001_v4 = vrot.slane %v999_v61, 5  ;;  %v1013_v6 = vshll.u32 %v1823_v57, 16  ;;  %v1869_v30 = vld [vmem:[%s2176_s26 + $0x8] sm:$0xf]  ;;  %v2090_v32 = vld [vmem:[%s2176_s26 + $0x50] ss:$8 sps:$4 sm:$0xff]  }
  0x35   : > { %1986 = vmatmul.mubr.msk.bf16.vlgmr.msra.gmra.mxu0 %vm246_vm1, %v2081_v3  ;;  %v1828_v63 = vcombine.low %v960_v54, %v974_v58  ;;  %v1004_v3 = vshrl.u32 %v1822_v53, 16  ;;  %v1021_v11 = vshll.u32 %v1824_v62, 16  ;;  %v1009_v12 = vrot.slane %v1007_v5, 5  ;;  %v1870_v33 = vld [vmem:[%s2176_s26 + $0xc] sm:$0x1] }
  0x36   : > { %2004 = vmatpush3.bf16.msra.mxu0 %v1180_v56  ;;  %1989 = vmatprep.mubr.msk.bf16.mxu0 %vm246_vm1, %v2084_v8  ;;  %v993_v56 = vshll.u32 %v1820_v41, 16  ;;  %v983_v8 = vrot.slane %v982_v0, 4  ;;  %v1020_v13 = vrot.slane %v1018_v7, 4  ;;  %v1027_v15 = vshll.u32 %v1825_v2, 16  ;;  %v1871_v34 = vld [vmem:[%s2176_s26 + $0x10] sm:$0xf] }
  0x37   : > { %2044 = vmatprep.subr.msk.bf16.mxu0 %vm259_vm0, %v2292_v27  ;;  %v1006_v10 = vrot.slane %v1004_v3, 4  ;;  %v1023_v19 = vrot.slane %v1021_v11, 5  ;;  %v1015_v21 = vrot.slane %v1013_v6, 5  ;;  %v1531_v25 = vsel %vm259_vm0, %v2292_v27, 0  ;;  %v1872_v37 = vld [vmem:[%s2176_s26 + $0x14] sm:$0x1] }
  0x38   : > { %v995_v1 = vrot.slane %v993_v56, 5  ;;  %v988_v17 = vsel %vm2218_vm4, %v983_v8, %v987_v59  ;;  %v1029_v24 = vrot.slane %v1027_v15, 5  ;;  %v1393_v35 = vshrl.u32 %v1869_v30, 16  ;;  %v1873_v45 = vld [vmem:[%s2176_s26 + $0x18] sm:$0xf] }
  0x39   : > { %v1010_v20 = vor.u32 %v1009_v12, %v1006_v10  ;;  %v1024_v23 = vor.u32 %v1023_v19, %v1020_v13  ;;  %v1396_v39 = vshll.u32 %v1869_v30, 16  ;;  %v1402_v27 = vshll.u32 %v1870_v33, 16  ;;  %v2089_v51 = vld [vmem:[%s2176_s26 + $0x38] ss:$8 sps:$4 sm:$0xff]   ;;  %v1876_v38 = vld [vmem:[%s2176_s26 + $0x24] sm:$0x1] }
  0x3a   : > { %v996_v9 = vor.u32 %v995_v1, %v992_v60  ;;  %v1407_v40 = vshrl.u32 %v1871_v34, 16  ;;  %v1410_v44 = vshll.u32 %v1871_v34, 16  ;;  %v1416_v14 = vshll.u32 %v1872_v37, 16  ;;  %v1875_v54 = vld [vmem:[%s2176_s26 + $0x20] sm:$0xf] }
  0x3b   : > { %1996 = vmatmul.mubr.msk.bf16.vlgmr.msra.gmra.mxu1 %vm246_vm1, %v1828_v63  ;;  %v1011_v28 = vrot.slane %v1010_v20, 4  ;;  %v1398_v47 = vrot.slane %v1396_v39, 5  ;;  %v1404_v48 = vrot.slane %v1402_v27, 5  ;;  %v1421_v56 = vshrl.u32 %v1873_v45, 16  ;;  %v2091_v63 = vld [vmem:[%s2176_s26 + $0x60] ss:$8 sps:$4 sm:$0xff]  }
  0x3c   : > { %2014 = vmatpush3.bf16.msra.mxu1 %v1301_v31  ;;  %v997_v18 = vrot.slane %v996_v9, 4  ;;  %v1025_v31 = vrot.slane %v1024_v23, 4  ;;  %v1409_v49 = vrot.slane %v1407_v40, 4  ;;  %v1412_v52 = vrot.slane %v1410_v44, 5  ;;  %v2092_v6 = vld [vmem:[%s2176_s26 + $0x70] ss:$8 sps:$4 sm:$0xff]  }
  0x3d   : > { %1990 = vmatmul.mubr.msk.bf16.gmra.mxu0 %vm246_vm1, %v2085_v42  ;;  %v1016_v36 = vsel %vm2218_vm4, %v1011_v28, %v1015_v21  ;;  %v1395_v42 = vrot.slane %v1393_v35, 4  ;;  %v1418_v53 = vrot.slane %v1416_v14, 5  ;;  %v1424_v57 = vshll.u32 %v1873_v45, 16  ;;  %v1877_v11 = vld [vmem:[%s2176_s26 + $0x28] sm:$0xf] }
  0x3e   : > { %2005 = vmatprep.mubr.msk.bf16.mxu0 %vm246_vm1, %v2086_v50  ;;  %v1002_v22 = vsel %vm2218_vm4, %v997_v18, %v1001_v4  ;;  %v1030_v41 = vsel %vm2218_vm4, %v1025_v31, %v1029_v24  ;;  %v1874_v50 = vld [vmem:[%s2176_s26 + $0x1c] sm:$0x1]  ;;  %v1413_v59 = vor.u32 %v1412_v52, %v1409_v49  ;;  %v1435_v60 = vshrl.u32 %v1875_v54, 16  ;;  %v1878_v15 = vld [vmem:[%s2176_s26 + $0x2c] sm:$0x1] }
  0x3f   : > { %v1829_v26 = vcombine.low %v988_v17, %v1002_v22  ;;  %v1830_v46 = vcombine.low %v1016_v36, %v1030_v41  ;;  %v1399_v55 = vor.u32 %v1398_v47, %v1395_v42  ;;  %v1430_v58 = vshll.u32 %v1874_v50, 16  ;;  %v1880_v17 = vld [vmem:[%s2176_s26 + $0x34] sm:$0x1]  ;;  %v1881_v22 = vld [vmem:[%s2176_s26 + $0x38] sm:$0xf] }
  0x40   : > { %v1438_v61 = vshll.u32 %v1875_v54, 16  ;;  %v1444_v62 = vshll.u32 %v1876_v38, 16  ;;  %v1423_v1 = vrot.slane %v1421_v56, 4  ;;  %v1426_v2 = vrot.slane %v1424_v57, 5  ;;  %v1882_v28 = vld [vmem:[%s2176_s26 + $0x3c] sm:$0x1] }
  0x41   : > { %1999 = vmatprep.mubr.msk.bf16.mxu1 %vm246_vm1, %v1829_v26  ;;  %v1400_v0 = vrot.slane %v1399_v55, 4  ;;  %v1414_v3 = vrot.slane %v1413_v59, 4  ;;  %v1437_v4 = vrot.slane %v1435_v60, 4  ;;  %v1432_v9 = vrot.slane %v1430_v58, 5  ;;  %v1883_v33 = vld [vmem:[%s2176_s26 + $0x40] sm:$0xf] }
  0x42   : > { %v1440_v5 = vrot.slane %v1438_v61, 5  ;;  %v1427_v8 = vor.u32 %v1426_v2, %v1423_v1  ;;  %v1446_v10 = vrot.slane %v1444_v62, 5  ;;  %v1449_v20 = vshrl.u32 %v1877_v11, 16  ;;  %v1884_v39 = vld [vmem:[%s2176_s26 + $0x44] sm:$0x1] }
  0x43   : > { %2000 = vmatmul.mubr.msk.bf16.gmra.mxu1 %vm246_vm1, %v1830_v46  ;;  %v1405_v7 = vsel %vm2218_vm4, %v1400_v0, %v1404_v48  ;;  %v1419_v12 = vsel %vm2218_vm4, %v1414_v3, %v1418_v53  ;;  %v1452_v21 = vshll.u32 %v1877_v11, 16  ;;  %v1458_v24 = vshll.u32 %v1878_v15, 16  ;;  %v2093_v47 = vld [vmem:[%s2176_s26 + $0x80] ss:$8 sps:$4 sm:$0xff]  }
  0x44   : > { %2015 = vmatprep.mubr.msk.bf16.mxu1 %vm246_vm1, %v2090_v32  ;;  %v1441_v13 = vor.u32 %v1440_v5, %v1437_v4  ;;  %v1886_v18 = vcombine.low %v1405_v7, %v1419_v12  ;;  %v1428_v19 = vrot.slane %v1427_v8, 4  ;;  %v1451_v30 = vrot.slane %v1449_v20, 4 }
  0x45   : > { %2006 = vmatmul.mubr.msk.bf16.vlgmr.msra.gmra.mxu0 %vm246_vm1, %v2087_v16  ;;  %v1879_v16 = vld [vmem:[%s2176_s26 + $0x30] sm:$0xf]  ;;  %v1454_v31 = vrot.slane %v1452_v21, 5  ;;  %v1472_v32 = vshll.u32 %v1880_v17, 16  ;;  %v1460_v35 = vrot.slane %v1458_v24, 5  ;;  %v1477_v42 = vshrl.u32 %v1881_v22, 16 }
  0x46   : > { %2024 = vmatpush3.bf16.msra.mxu0 %v1531_v25  ;;  %2009 = vmatprep.mubr.msk.bf16.mxu0 %vm246_vm1, %v2088_v29  ;;  %v1442_v23 = vrot.slane %v1441_v13, 4  ;;  %v1463_v25 = vshrl.u32 %v1879_v16, 16  ;;  %v1466_v26 = vshll.u32 %v1879_v16, 16  ;;  %v1433_v29 = vsel %vm2218_vm4, %v1428_v19, %v1432_v9 }
  0x47   : > { %v1455_v40 = vor.u32 %v1454_v31, %v1451_v30  ;;  %v1474_v41 = vrot.slane %v1472_v32, 5  ;;  %v1480_v14 = vshll.u32 %v1881_v22, 16  ;;  %v1486_v45 = vshll.u32 %v1882_v28, 16 }
  0x48   : > { %v1447_v34 = vsel %vm2218_vm4, %v1442_v23, %v1446_v10  ;;  %v1465_v36 = vrot.slane %v1463_v25, 4  ;;  %v1468_v37 = vrot.slane %v1466_v26, 5  ;;  %v1491_v46 = vshrl.u32 %v1883_v33, 16 }
  0x49   : > { %v1887_v27 = vcombine.low %v1433_v29, %v1447_v34  ;;  %v1456_v48 = vrot.slane %v1455_v40, 4  ;;  %v1479_v49 = vrot.slane %v1477_v42, 4  ;;  %v1494_v50 = vshll.u32 %v1883_v33, 16 }
  0x4a   : > { %v1469_v44 = vor.u32 %v1468_v37, %v1465_v36  ;;  %v1482_v53 = vrot.slane %v1480_v14, 5  ;;  %v1493_v54 = vrot.slane %v1491_v46, 4  ;;  %v1488_v58 = vrot.slane %v1486_v45, 5 }
  0x4b   : > { %2016 = vmatmul.mubr.msk.bf16.vlgmr.msra.gmra.mxu1 %vm246_vm1, %v2091_v63  ;;  %v1461_v38 = vsel %vm2218_vm4, %v1456_v48, %v1460_v35  ;;  %v1496_v55 = vrot.slane %v1494_v50, 5 }
  0x4c   : > { %2019 = vmatprep.mubr.msk.bf16.mxu1 %vm246_vm1, %v2092_v6  ;;  %v1470_v52 = vrot.slane %v1469_v44, 4  ;;  %v1483_v57 = vor.u32 %v1482_v53, %v1479_v49 }
  0x4d   : > { %2010 = vmatmul.mubr.msk.bf16.gmra.mxu0 %vm246_vm1, %v2089_v51  ;;  %v1500_v51 = vshll.u32 %v1884_v39, 16  ;;  %v1497_v60 = vor.u32 %v1496_v55, %v1493_v54 }
  0x4e   : > { %2025 = vmatprep.mubr.msk.bf16.mxu0 %vm246_vm1, %v1886_v18  ;;  %v1475_v56 = vsel %vm2218_vm4, %v1470_v52, %v1474_v41  ;;  %v1484_v62 = vrot.slane %v1483_v57, 4 }
  0x4f   : > { %v1888_v59 = vcombine.low %v1461_v38, %v1475_v56  ;;  %v1502_v61 = vrot.slane %v1500_v51, 5  ;;  %v1498_v63 = vrot.slane %v1497_v60, 4 }
  0x50   : > { %v1489_v0 = vsel %vm2218_vm4, %v1484_v62, %v1488_v58 }
  0x51   : > { %v1503_v1 = vsel %vm2218_vm4, %v1498_v63, %v1502_v61 }
  0x52   : > { %v1889_v2 = vcombine.low %v1489_v0, %v1503_v1 }
  0x53   : > { %2020 = vmatmul.mubr.msk.bf16.gmra.mxu1 %vm246_vm1, %v2093_v47 }
  0x55   : > { %2026 = vmatmul.mubr.msk.bf16.vlgmr.msra.gmra.mxu0 %vm246_vm1, %v1887_v27 }
  0x56   : > { %2029 = vmatprep.mubr.msk.bf16.mxu0 %vm246_vm1, %v1888_v59 }
  0x5d   : > { %2030 = vmatmul.mubr.msk.bf16.gmra.mxu0 %vm246_vm1, %v1889_v2 }
  0xd2   : > { %v1947_v5 = vpop.f32.mrf.mxu0 }
  0xd3   : > { %v1951_v3 = vpop.f32.mrf.mxu1 }
  0xd4   : > { %v297_v8 = vpop.f32.mrf.mxu0 }
  0xd5   : > { %v313_v4 = vpop.f32.mrf.mxu1 }
  0xd6   : > { %v1948_v11 = vpop.f32.mrf.mxu0 }
  0xd7   : > { %v2383_v6 = vpop.f32.mrf.mxu1 }
  0xd8   : > { %v300_v15 = vpop.f32.mrf.mxu0 }
  0xd9   : > { %v2385_v7 = vpop.f32.mrf.mxu1 }
  0xdb   : > { %v1957_v9 = vpop.f32.mrf.mxu1 }
  0xdc   : > { %v406_v14 = vadd.f32 %v1957_v9, %v1947_v5 }
  0xdd   : > { %v397_v10 = vpop.f32.mrf.mxu1 }
  0xde   : > { %v398_v47 = vadd.f32 %v397_v10, %v297_v8 }
  0xdf   : > { %v1958_v12 = vpop.f32.mrf.mxu1 }
  0xe0   : > { %v409_v50 = vadd.f32 %v1958_v12, %v1948_v11 }
  0xe1   : > { %v400_v13 = vpop.f32.mrf.mxu1 }
  0xe2   : > { %v401_v54 = vadd.f32 %v400_v13, %v300_v15 }
  0xe3   : > { %v1961_v16 = vpop.f32.mrf.mxu1  ;;  %v1967_v43 = vpop.f32.mrf.mxu0 }
  0xe4   : > { %v655_v49 = vadd.f32 %v1967_v43, %v406_v14  ;;  %v422_v61 = vadd.f32 %v1961_v16, %v1951_v3 }
  0xe5   : > { %v413_v17 = vpop.f32.mrf.mxu1  ;;  %v622_v18 = vpop.f32.mrf.mxu0 }
  0xe6   : > { %v653_v53 = vadd.f32 %v622_v18, %v398_v47  ;;  %v414_v1 = vadd.f32 %v413_v17, %v313_v4 }
  0xe7   : > { %v1962_v19 = vpop.f32.mrf.mxu1  ;;  %v1968_v20 = vpop.f32.mrf.mxu0 }
  0xe8   : > { %v656_v56 = vadd.f32 %v1968_v20, %v409_v50  ;;  %v425_v11 = vadd.f32 %v1962_v19, %v2383_v6 }
  0xe9   : > { %v416_v21 = vpop.f32.mrf.mxu1  ;;  %v625_v22 = vpop.f32.mrf.mxu0 }
  0xea   : > { %v654_v60 = vadd.f32 %v625_v22, %v401_v54  ;;  %v417_v16 = vadd.f32 %v416_v21, %v2385_v7 }
  0xeb   : > { %v1977_v23 = vpop.f32.mrf.mxu1 }
  0xec   : > { %v776_v38 = vadd.f32 %v1977_v23, %v655_v49 }
  0xed   : > { %v743_v24 = vpop.f32.mrf.mxu1  ;;  %v1971_v25 = vpop.f32.mrf.mxu0 }
  0xee   : > { %v774_v57 = vadd.f32 %v743_v24, %v653_v53  ;;  %v659_v13 = vadd.f32 %v1971_v25, %v422_v61 }
  0xef   : > { %v1978_v26 = vpop.f32.mrf.mxu1  ;;  %v638_v28 = vpop.f32.mrf.mxu0 }
  0xf0   : > { %v777_v63 = vadd.f32 %v1978_v26, %v656_v56  ;;  %v657_v3 = vadd.f32 %v638_v28, %v414_v1 }
  0xf1   : > { %v746_v29 = vpop.f32.mrf.mxu1  ;;  %v1972_v30 = vpop.f32.mrf.mxu0 }
  0xf2   : > { %v775_v8 = vadd.f32 %v746_v29, %v654_v60  ;;  %v660_v26 = vadd.f32 %v1972_v30, %v425_v11  ;;  %v1894_v30 = vld [vmem:[%s2440_s2] ss:$0 sm:$0xff] }
  0xf3   : > { %v1981_v31 = vpop.f32.mrf.mxu1  ;;  %v2387_v32 = vpop.f32.mrf.mxu0 }
  0xf4   : > { %v780_v17 = vadd.f32 %v1981_v31, %v659_v13 }
  0xf5   : > { %v759_v33 = vpop.f32.mrf.mxu1  ;;  %v1987_v34 = vpop.f32.mrf.mxu0 }
  0xf6   : > { %v897_v62 = vadd.f32 %v1987_v34, %v776_v38  ;;  %v778_v29 = vadd.f32 %v759_v33, %v657_v3 }
  0xf7   : > { %v1982_v35 = vpop.f32.mrf.mxu1  ;;  %v864_v36 = vpop.f32.mrf.mxu0 }
  0xf8   : > { %v895_v5 = vadd.f32 %v864_v36, %v774_v57  ;;  %v781_v28 = vadd.f32 %v1982_v35, %v660_v26 }
  0xf9   : > { %v1988_v37 = vpop.f32.mrf.mxu0  ;;  %v2389_v39 = vpop.f32.mrf.mxu1 }
  0xfa   : > { %v898_v15 = vadd.f32 %v1988_v37, %v777_v63  ;;  %v658_v37 = vadd.f32 %v2387_v32, %v417_v16 }
  0xfb   : > { %v867_v27 = vpop.f32.mrf.mxu0  ;;  %v1997_v41 = vpop.f32.mrf.mxu1 }
  0xfc   : > { %v1127_v9 = vadd.f32 %v1997_v41, %v897_v62  ;;  %v896_v4 = vadd.f32 %v867_v27, %v775_v8  ;;  %v779_v14 = vadd.f32 %v2389_v39, %v658_v37 }
  0xfd   : > { %v1991_v40 = vpop.f32.mrf.mxu0  ;;  %v1094_v44 = vpop.f32.mrf.mxu1 }
  0xfe   : > { %v1125_v43 = vadd.f32 %v1094_v44, %v895_v5  ;;  %v901_v7 = vadd.f32 %v1991_v40, %v780_v17 }
  0xff   : > { %v880_v42 = vpop.f32.mrf.mxu0  ;;  %v1998_v46 = vpop.f32.mrf.mxu1 }
 0x100   : > { %v1128_v23 = vadd.f32 %v1998_v46, %v898_v15  ;;  %v899_v44 = vadd.f32 %v880_v42, %v778_v29 }
 0x101   : > { %v2391_v45 = vpop.f32.mrf.mxu0  ;;  %v1097_v51 = vpop.f32.mrf.mxu1 }
 0x102   : > { %v1126_v19 = vadd.f32 %v1097_v51, %v896_v4  ;;  %v902_v35 = vadd.f32 %v2391_v45, %v781_v28 }
 0x103   : > { %v2393_v48 = vpop.f32.mrf.mxu0  ;;  %v2001_v58 = vpop.f32.mrf.mxu1 }
 0x104   : > { %v1131_v47 = vadd.f32 %v2001_v58, %v901_v7  ;;  %v900_v54 = vadd.f32 %v2393_v48, %v779_v14 }
 0x105   : > { %v2007_v52 = vpop.f32.mrf.mxu0  ;;  %v1110_v0 = vpop.f32.mrf.mxu1 }
 0x106   : > { %v1249_v22 = vadd.f32 %v2007_v52, %v1127_v9  ;;  %v1129_v39 = vadd.f32 %v1110_v0, %v899_v44 }
 0x107   : > { %v1216_v55 = vpop.f32.mrf.mxu0  ;;  %v2002_v10 = vpop.f32.mrf.mxu1 }
 0x108   : > { %v1247_v6 = vadd.f32 %v1216_v55, %v1125_v43  ;;  %v1132_v56 = vadd.f32 %v2002_v10, %v902_v35 }
 0x109   : > { %v2008_v59 = vpop.f32.mrf.mxu0  ;;  %v1113_v18 = vpop.f32.mrf.mxu1 }
 0x10a   : > { %v1250_v21 = vadd.f32 %v2008_v59, %v1128_v23  ;;  %v1130_v59 = vadd.f32 %v1113_v18, %v900_v54 }
 0x10b   : > { %v1219_v2 = vpop.f32.mrf.mxu0  ;;  %v2017_v24 = vpop.f32.mrf.mxu1 }
 0x10c   : > { %v1370_v25 = vadd.f32 %v2017_v24, %v1249_v22  ;;  %v1248_v33 = vadd.f32 %v1219_v2, %v1126_v19 }
 0x10d   : > { %v2011_v12 = vpop.f32.mrf.mxu0  ;;  %v1337_v36 = vpop.f32.mrf.mxu1 }
 0x10e   : > { %v1368_v31 = vadd.f32 %v1337_v36, %v1247_v6  ;;  %v1253_v55 = vadd.f32 %v2011_v12, %v1131_v47 }
 0x10f   : > { %v1232_v20 = vpop.f32.mrf.mxu0  ;;  %v2018_v27 = vpop.f32.mrf.mxu1 }
 0x110   : > { %v1371_v50 = vadd.f32 %v2018_v27, %v1250_v21  ;;  %v1251_v61 = vadd.f32 %v1232_v20, %v1129_v39 }
 0x111   : > { %v2012_v34 = vpop.f32.mrf.mxu0  ;;  %v1340_v32 = vpop.f32.mrf.mxu1 }
 0x112   : > { %v1369_v52 = vadd.f32 %v1340_v32, %v1248_v33  ;;  %v1254_v48 = vadd.f32 %v2012_v34, %v1132_v56 }
 0x113   : > { %v1235_v41 = vpop.f32.mrf.mxu0  ;;  %v2021_v53 = vpop.f32.mrf.mxu1 }
 0x114   : > { %v1374_v0 = vadd.f32 %v2021_v53, %v1253_v55  ;;  %v1252_v10 = vadd.f32 %v1235_v41, %v1130_v59 }
 0x115   : > { %v2027_v46 = vpop.f32.mrf.mxu0  ;;  %v1353_v58 = vpop.f32.mrf.mxu1 }
 0x116   : > { %v1600_v49 = vadd.f32 %v2027_v46, %v1370_v25  ;;  %v1372_v5 = vadd.f32 %v1353_v58, %v1251_v61 }
 0x117   : > { %v1567_v40 = vpop.f32.mrf.mxu0  ;;  %v2022_v1 = vpop.f32.mrf.mxu1 }
 0x118   : > { %v1615_v42 = vadd.f32 %v1894_v30, %v1600_v49  ;;  %v1598_v51 = vadd.f32 %v1567_v40, %v1368_v31  ;;  %v1375_v12 = vadd.f32 %v2022_v1, %v1254_v48 }
 0x119   : > { %v2028_v38 = vpop.f32.mrf.mxu0  ;;  %v1356_v9 = vpop.f32.mrf.mxu1 }
 0x11a   : > { %1623 = vst.msk [vmem:[%s2410_s12 + $0x10] sm:$0xff] %vm246_vm1, %v1615_v42  ;;  %v1613_v45 = vadd.f32 %v1894_v30, %v1598_v51  ;;  %v1601_v57 = vadd.f32 %v2028_v38, %v1371_v50  ;;  %v1373_v18 = vadd.f32 %v1356_v9, %v1252_v10 }
 0x11b   : > { %v1570_v60 = vpop.f32.mrf.mxu0 }
 0x11c   : > { %1621 = vst.msk [vmem:[%s2410_s12] sm:$0xff] %vm246_vm1, %v1613_v45  ;;  %v1616_v62 = vadd.f32 %v1894_v30, %v1601_v57  ;;  %v1599_v63 = vadd.f32 %v1570_v60, %v1369_v52 }
 0x11d   : > { %v2031_v8 = vpop.f32.mrf.mxu0 }
 0x11e   : > { %1624 = vst.msk [vmem:[%s2410_s12 + $0x18] sm:$0xff] %vm246_vm1, %v1616_v62  ;;  %v1614_v2 = vadd.f32 %v1894_v30, %v1599_v63  ;;  %v1604_v11 = vadd.f32 %v2031_v8, %v1374_v0 }
 0x11f   : > { %v1583_v13 = vpop.f32.mrf.mxu0 }
 0x120   : > { %1622 = vst.msk [vmem:[%s2410_s12 + $0x8] sm:$0xff] %vm246_vm1, %v1614_v2  ;;  %v1619_v15 = vadd.f32 %v1894_v30, %v1604_v11  ;;  %v1602_v43 = vadd.f32 %v1583_v13, %v1372_v5 }
 0x121   : > { %v2032_v3 = vpop.f32.mrf.mxu0 }
 0x122   : > { %1627 = vst.msk [vmem:[%s2410_s12 + $0x30] sm:$0xff] %vm246_vm1, %v1619_v15  ;;  %v1617_v16 = vadd.f32 %v1894_v30, %v1602_v43  ;;  %v1605_v20 = vadd.f32 %v2032_v3, %v1375_v12 }
 0x123   : > { %v1586_v4 = vpop.f32.mrf.mxu0 }
 0x124   : > { %1625 = vst.msk [vmem:[%s2410_s12 + $0x20] sm:$0xff] %vm246_vm1, %v1617_v16  ;;  %v1620_v17 = vadd.f32 %v1894_v30, %v1605_v20  ;;  %v1603_v22 = vadd.f32 %v1586_v4, %v1373_v18 }
 0x126   : > { %1628 = vst.msk [vmem:[%s2410_s12 + $0x38] sm:$0xff] %vm246_vm1, %v1620_v17  ;;  %v1618_v23 = vadd.f32 %v1894_v30, %v1603_v22 }
 0x128   : > { %1626 = vst.msk [vmem:[%s2410_s12 + $0x28] sm:$0xff] %vm246_vm1, %v1618_v23 }
 0x129 PF: > { %s13_s14 = sadd.s32 1, %s2116_s14   ;;  %s2444_s12 = smov %s2112_s13 }
 0x12a   : > { %p10_p6 = scmp.ge.s32.totalorder %s13_s14, 4   ;;  %s2445_s13 = smov %s2447_s15 }
 0x12c   :  { %12 = sbr.rel (!%p10_p6) target bundleno = 2 (0x2), region = 76 }

</bundles_post_ra>
